<compile_context>
chip_gen: v7x
topology: tpu7x:2x2x1
jax: 0.10.0
libtpu: 0.0.40
codegen_flags: <defaults>
</compile_context>

<pallas_src>
import functools

import jax
import jax.numpy as jnp
from jax import lax
from jax.experimental import pallas as pl
from jax.experimental.pallas import tpu as pltpu


def _fused_mhsa_kernel(x_ref, wqkv_ref, bqkv_ref, wp_ref, bp_ref, o_ref, *,
                       n_head, scale):
    x = x_ref[0]                                   # (T, C)
    T, C = x.shape
    hs = C // n_head

    # Single stacked QKV projection for all heads: (T, C) @ (C, 3C) -> (T, 3C)
    qkv = (jnp.dot(x, wqkv_ref[...], preferred_element_type=jnp.float32)
           + bqkv_ref[...])

    # Causal mask: computed once per grid step, shared across all heads.
    row = lax.broadcasted_iota(jnp.int32, (T, T), 0)
    col = lax.broadcasted_iota(jnp.int32, (T, T), 1)
    causal = col <= row
    neg_big = jnp.float32(-1e30)   # finite mask value: avoids inf-inf -> NaN on padded rows

    head_outs = []
    for h in range(n_head):        # small static loop, fully unrolled
        # scale q (T*hs elements) instead of the (T,T) score matrix
        q = qkv[:, h * hs:(h + 1) * hs] * scale
        k = qkv[:, C + h * hs:C + (h + 1) * hs]
        v = qkv[:, 2 * C + h * hs:2 * C + (h + 1) * hs]

        wei = lax.dot_general(q, k, (((1,), (1,)), ((), ())),
                              preferred_element_type=jnp.float32)   # (T, T) = q @ k^T
        wei = jnp.where(causal, wei, neg_big)

        m = jnp.max(wei, axis=-1, keepdims=True)
        e = jnp.exp(wei - m)
        s = jnp.sum(e, axis=-1, keepdims=True)
        # normalize after the (T,T)@(T,hs) matmul: O(T*hs) multiplies, EUP reciprocal
        o_h = (jnp.dot(e, v, preferred_element_type=jnp.float32)
               * pl.reciprocal(s, approx=False))
        head_outs.append(o_h)

    # torch.cat([h(x) for h in heads], dim=-1)  ->  (T, C), heads contiguous in lanes
    concat = jnp.concatenate(head_outs, axis=-1)

    # Final output projection fused into the same kernel body.
    o_ref[0] = (jnp.dot(concat, wp_ref[...], preferred_element_type=jnp.float32)
                + bp_ref[...])


def multi_head_self_attention(x, params, n_head):
    B, T, C = x.shape
    scale = float(C) ** -0.5   # reference uses n_embed**-0.5, NOT head_size**-0.5

    wqkv, bqkv = params["wqkv"], params["bqkv"]   # (C, 3C), (1, 3C)
    wp, bp = params["wp"], params["bp"]           # (C, C) pre-transposed, (1, C)

    return pl.pallas_call(
        functools.partial(_fused_mhsa_kernel, n_head=n_head, scale=scale),
        out_shape=jax.ShapeDtypeStruct((B, T, C), jnp.float32),
        grid=(B,),
        in_specs=[
            pl.BlockSpec((1, T, C), lambda b: (b, 0, 0)),
            pl.BlockSpec((C, 3 * C), lambda b: (0, 0)),
            pl.BlockSpec((1, 3 * C), lambda b: (0, 0)),
            pl.BlockSpec((C, C), lambda b: (0, 0)),
            pl.BlockSpec((1, C), lambda b: (0, 0)),
        ],
        out_specs=pl.BlockSpec((1, T, C), lambda b: (b, 0, 0)),
        compiler_params=pltpu.CompilerParams(
            dimension_semantics=("parallel",)),   # batch steps shard across v7x's 2 TCs
    )(x, wqkv, bqkv, wp, bp)


def init_params(key, n_embed, n_head):
    """Deterministic init mimicking nn.Linear's U(-1/sqrt(fan_in), 1/sqrt(fan_in)).

    Weights are stored pre-packed for the kernel:
      wqkv: (C, 3C) with columns [q heads | k heads | v heads], each head's hs columns
            contiguous; bqkv: (1, 3C).  wp: (C, C) pre-transposed; bp: (1, C).
    """
    del n_head  # packing layout is head-contiguous regardless of n_head
    bound = 1.0 / (n_embed ** 0.5)
    ks = jax.random.split(key, 4)

    def u(k, shape):
        return jax.random.uniform(k, shape, jnp.float32, -bound, bound)

    return {
        "wqkv": u(ks[0], (n_embed, 3 * n_embed)),
        "bqkv": u(ks[1], (1, 3 * n_embed)),
        "wp":   u(ks[2], (n_embed, n_embed)),
        "bp":   u(ks[3], (1, n_embed)),
    }


def _reference(x, params, n_head):
    """Plain-JAX reference reproducing the PyTorch forward."""
    B, T, C = x.shape
    hs = C // n_head
    qkv = x @ params["wqkv"] + params["bqkv"]           # (B, T, 3C)
    q_all, k_all, v_all = qkv[..., :C], qkv[..., C:2 * C], qkv[..., 2 * C:]

    outs = []
    for h in range(n_head):
        q = q_all[..., h * hs:(h + 1) * hs]
        k = k_all[..., h * hs:(h + 1) * hs]
        v = v_all[..., h * hs:(h + 1) * hs]
        wei = jnp.einsum("btd,bsd->bts", q, k) * (C ** -0.5)
        mask = jnp.tril(jnp.ones((T, T), bool))
        wei = jnp.where(mask, wei, -jnp.inf)
        wei = jax.nn.softmax(wei, axis=-1)
        outs.append(jnp.einsum("bts,bsd->btd", wei, v))
    cat = jnp.concatenate(outs, axis=-1)
    return cat @ params["wp"] + params["bp"]


if __name__ == "__main__":
    B, T, n_embed, n_head = 2, 8, 32, 4

    key = jax.random.PRNGKey(0)
    k_x, k_p = jax.random.split(key)
    x = jax.random.normal(k_x, (B, T, n_embed), dtype=jnp.float32)
    params = init_params(k_p, n_embed, n_head)

    out = multi_head_self_attention(x, params, n_head)
    out = jax.block_until_ready(out)

    ref = _reference(x, params, n_head)
    assert out.shape == (B, T, n_embed)
    assert jnp.allclose(out, ref, rtol=1e-5, atol=1e-5), "mismatch vs reference"

    print("KERNEL_OK")
</pallas_src>

<mosaic_0001>
module attributes {stable_mosaic.version = 11 : i64} {
  func.func @_fused_mhsa_kernel(%arg0: i32, %arg1: memref<1x8x32xf32, #tpu.memory_space<vmem>>, %arg2: memref<32x96xf32, #tpu.memory_space<vmem>>, %arg3: memref<1x96xf32, #tpu.memory_space<vmem>>, %arg4: memref<32x32xf32, #tpu.memory_space<vmem>>, %arg5: memref<1x32xf32, #tpu.memory_space<vmem>>, %arg6: memref<1x8x32xf32, #tpu.memory_space<vmem>>) attributes {dimension_semantics = [#tpu.dimension_semantics<parallel>], iteration_bounds = array<i64: 2>, scalar_prefetch = 0 : i64, scratch_operands = 0 : i64, tpu.core_type = #tpu.core_type<tc>, window_params = [{transform_indices = @transform_0, window_bounds = array<i64: 1, 8, 32>}, {pipeline_mode = #tpu.pipeline_mode<synchronous>, transform_indices = @transform_1, window_bounds = array<i64: 32, 96>}, {pipeline_mode = #tpu.pipeline_mode<synchronous>, transform_indices = @transform_2, window_bounds = array<i64: 1, 96>}, {pipeline_mode = #tpu.pipeline_mode<synchronous>, transform_indices = @transform_3, window_bounds = array<i64: 32, 32>}, {pipeline_mode = #tpu.pipeline_mode<synchronous>, transform_indices = @transform_4, window_bounds = array<i64: 1, 32>}, {transform_indices = @transform_5, window_bounds = array<i64: 1, 8, 32>}]} {
    %c0 = arith.constant 0 : index
    %c0_0 = arith.constant 0 : index
    %c0_1 = arith.constant 0 : index
    %0 = vector.load %arg1[%c0, %c0_0, %c0_1] : memref<1x8x32xf32, #tpu.memory_space<vmem>>, vector<1x8x32xf32>
    %1 = vector.shape_cast %0 : vector<1x8x32xf32> to vector<8x32xf32>
    %c0_2 = arith.constant 0 : index
    %c0_3 = arith.constant 0 : index
    %2 = vector.load %arg2[%c0_2, %c0_3] : memref<32x96xf32, #tpu.memory_space<vmem>>, vector<32x96xf32>
    %cst = arith.constant dense<0.000000e+00> : vector<8x96xf32>
    %3 = tpu.matmul %1, %2, %cst {dimension_numbers = #tpu.dot_dimension_numbers<[1], [0], [0], [1], [0, 0, 1, 1], [], []>} : vector<8x32xf32>, vector<32x96xf32>, vector<8x96xf32> -> vector<8x96xf32>
    %c0_4 = arith.constant 0 : index
    %c0_5 = arith.constant 0 : index
    %4 = vector.load %arg3[%c0_4, %c0_5] : memref<1x96xf32, #tpu.memory_space<vmem>>, vector<1x96xf32>
    %5 = vector.broadcast %4 : vector<1x96xf32> to vector<8x96xf32>
    %6 = arith.addf %3, %5 : vector<8x96xf32>
    %7 = tpu.iota {dimensions = array<i32: 0>} : vector<8x8xi32>
    %8 = tpu.iota {dimensions = array<i32: 1>} : vector<8x8xi32>
    %9 = arith.cmpi sle, %8, %7 : vector<8x8xi32>
    %10 = vector.extract_strided_slice %6 {offsets = [0, 0], sizes = [8, 8], strides = [1, 1]} : vector<8x96xf32> to vector<8x8xf32>
    %cst_6 = arith.constant 0.176776692 : f32
    %11 = vector.broadcast %cst_6 : f32 to vector<8x8xf32>
    %12 = arith.mulf %10, %11 : vector<8x8xf32>
    %13 = vector.extract_strided_slice %6 {offsets = [0, 32], sizes = [8, 8], strides = [1, 1]} : vector<8x96xf32> to vector<8x8xf32>
    %14 = vector.extract_strided_slice %6 {offsets = [0, 64], sizes = [8, 8], strides = [1, 1]} : vector<8x96xf32> to vector<8x8xf32>
    %cst_7 = arith.constant dense<0.000000e+00> : vector<8x8xf32>
    %15 = tpu.matmul %12, %13, %cst_7 {dimension_numbers = #tpu.dot_dimension_numbers<[1], [1], [0], [0], [0, 0, 1, 0], [], []>} : vector<8x8xf32>, vector<8x8xf32>, vector<8x8xf32> -> vector<8x8xf32>
    %cst_8 = arith.constant -1.000000e+30 : f32
    %16 = vector.broadcast %cst_8 : f32 to vector<8x8xf32>
    %17 = arith.select %9, %15, %16 : vector<8x8xi1>, vector<8x8xf32>
    %cst_9 = arith.constant dense<0xFF800000> : vector<8xf32>
    %18 = vector.multi_reduction <maximumf>, %17, %cst_9 [1] : vector<8x8xf32> to vector<8xf32>
    %19 = vector.shape_cast %18 : vector<8xf32> to vector<8x1xf32>
    %20 = vector.broadcast %19 : vector<8x1xf32> to vector<8x8xf32>
    %21 = arith.subf %17, %20 : vector<8x8xf32>
    %22 = math.exp %21 : vector<8x8xf32>
    %cst_10 = arith.constant dense<0.000000e+00> : vector<8xf32>
    %23 = vector.multi_reduction <add>, %22, %cst_10 [1] : vector<8x8xf32> to vector<8xf32>
    %24 = vector.shape_cast %23 : vector<8xf32> to vector<8x1xf32>
    %cst_11 = arith.constant dense<0.000000e+00> : vector<8x8xf32>
    %25 = tpu.matmul %22, %14, %cst_11 {dimension_numbers = #tpu.dot_dimension_numbers<[1], [0], [0], [1], [0, 0, 1, 1], [], []>} : vector<8x8xf32>, vector<8x8xf32>, vector<8x8xf32> -> vector<8x8xf32>
    %26 = tpu.reciprocal %24 : vector<8x1xf32> -> vector<8x1xf32>
    %27 = vector.broadcast %26 : vector<8x1xf32> to vector<8x8xf32>
    %28 = arith.mulf %25, %27 : vector<8x8xf32>
    %29 = vector.extract_strided_slice %6 {offsets = [0, 8], sizes = [8, 8], strides = [1, 1]} : vector<8x96xf32> to vector<8x8xf32>
    %cst_12 = arith.constant 0.176776692 : f32
    %30 = vector.broadcast %cst_12 : f32 to vector<8x8xf32>
    %31 = arith.mulf %29, %30 : vector<8x8xf32>
    %32 = vector.extract_strided_slice %6 {offsets = [0, 40], sizes = [8, 8], strides = [1, 1]} : vector<8x96xf32> to vector<8x8xf32>
    %33 = vector.extract_strided_slice %6 {offsets = [0, 72], sizes = [8, 8], strides = [1, 1]} : vector<8x96xf32> to vector<8x8xf32>
    %cst_13 = arith.constant dense<0.000000e+00> : vector<8x8xf32>
    %34 = tpu.matmul %31, %32, %cst_13 {dimension_numbers = #tpu.dot_dimension_numbers<[1], [1], [0], [0], [0, 0, 1, 0], [], []>} : vector<8x8xf32>, vector<8x8xf32>, vector<8x8xf32> -> vector<8x8xf32>
    %cst_14 = arith.constant -1.000000e+30 : f32
    %35 = vector.broadcast %cst_14 : f32 to vector<8x8xf32>
    %36 = arith.select %9, %34, %35 : vector<8x8xi1>, vector<8x8xf32>
    %cst_15 = arith.constant dense<0xFF800000> : vector<8xf32>
    %37 = vector.multi_reduction <maximumf>, %36, %cst_15 [1] : vector<8x8xf32> to vector<8xf32>
    %38 = vector.shape_cast %37 : vector<8xf32> to vector<8x1xf32>
    %39 = vector.broadcast %38 : vector<8x1xf32> to vector<8x8xf32>
    %40 = arith.subf %36, %39 : vector<8x8xf32>
    %41 = math.exp %40 : vector<8x8xf32>
    %cst_16 = arith.constant dense<0.000000e+00> : vector<8xf32>
    %42 = vector.multi_reduction <add>, %41, %cst_16 [1] : vector<8x8xf32> to vector<8xf32>
    %43 = vector.shape_cast %42 : vector<8xf32> to vector<8x1xf32>
    %cst_17 = arith.constant dense<0.000000e+00> : vector<8x8xf32>
    %44 = tpu.matmul %41, %33, %cst_17 {dimension_numbers = #tpu.dot_dimension_numbers<[1], [0], [0], [1], [0, 0, 1, 1], [], []>} : vector<8x8xf32>, vector<8x8xf32>, vector<8x8xf32> -> vector<8x8xf32>
    %45 = tpu.reciprocal %43 : vector<8x1xf32> -> vector<8x1xf32>
    %46 = vector.broadcast %45 : vector<8x1xf32> to vector<8x8xf32>
    %47 = arith.mulf %44, %46 : vector<8x8xf32>
    %48 = vector.extract_strided_slice %6 {offsets = [0, 16], sizes = [8, 8], strides = [1, 1]} : vector<8x96xf32> to vector<8x8xf32>
    %cst_18 = arith.constant 0.176776692 : f32
    %49 = vector.broadcast %cst_18 : f32 to vector<8x8xf32>
    %50 = arith.mulf %48, %49 : vector<8x8xf32>
    %51 = vector.extract_strided_slice %6 {offsets = [0, 48], sizes = [8, 8], strides = [1, 1]} : vector<8x96xf32> to vector<8x8xf32>
    %52 = vector.extract_strided_slice %6 {offsets = [0, 80], sizes = [8, 8], strides = [1, 1]} : vector<8x96xf32> to vector<8x8xf32>
    %cst_19 = arith.constant dense<0.000000e+00> : vector<8x8xf32>
    %53 = tpu.matmul %50, %51, %cst_19 {dimension_numbers = #tpu.dot_dimension_numbers<[1], [1], [0], [0], [0, 0, 1, 0], [], []>} : vector<8x8xf32>, vector<8x8xf32>, vector<8x8xf32> -> vector<8x8xf32>
    %cst_20 = arith.constant -1.000000e+30 : f32
    %54 = vector.broadcast %cst_20 : f32 to vector<8x8xf32>
    %55 = arith.select %9, %53, %54 : vector<8x8xi1>, vector<8x8xf32>
    %cst_21 = arith.constant dense<0xFF800000> : vector<8xf32>
    %56 = vector.multi_reduction <maximumf>, %55, %cst_21 [1] : vector<8x8xf32> to vector<8xf32>
    %57 = vector.shape_cast %56 : vector<8xf32> to vector<8x1xf32>
    %58 = vector.broadcast %57 : vector<8x1xf32> to vector<8x8xf32>
    %59 = arith.subf %55, %58 : vector<8x8xf32>
    %60 = math.exp %59 : vector<8x8xf32>
    %cst_22 = arith.constant dense<0.000000e+00> : vector<8xf32>
    %61 = vector.multi_reduction <add>, %60, %cst_22 [1] : vector<8x8xf32> to vector<8xf32>
    %62 = vector.shape_cast %61 : vector<8xf32> to vector<8x1xf32>
    %cst_23 = arith.constant dense<0.000000e+00> : vector<8x8xf32>
    %63 = tpu.matmul %60, %52, %cst_23 {dimension_numbers = #tpu.dot_dimension_numbers<[1], [0], [0], [1], [0, 0, 1, 1], [], []>} : vector<8x8xf32>, vector<8x8xf32>, vector<8x8xf32> -> vector<8x8xf32>
    %64 = tpu.reciprocal %62 : vector<8x1xf32> -> vector<8x1xf32>
    %65 = vector.broadcast %64 : vector<8x1xf32> to vector<8x8xf32>
    %66 = arith.mulf %63, %65 : vector<8x8xf32>
    %67 = vector.extract_strided_slice %6 {offsets = [0, 24], sizes = [8, 8], strides = [1, 1]} : vector<8x96xf32> to vector<8x8xf32>
    %cst_24 = arith.constant 0.176776692 : f32
    %68 = vector.broadcast %cst_24 : f32 to vector<8x8xf32>
    %69 = arith.mulf %67, %68 : vector<8x8xf32>
    %70 = vector.extract_strided_slice %6 {offsets = [0, 56], sizes = [8, 8], strides = [1, 1]} : vector<8x96xf32> to vector<8x8xf32>
    %71 = vector.extract_strided_slice %6 {offsets = [0, 88], sizes = [8, 8], strides = [1, 1]} : vector<8x96xf32> to vector<8x8xf32>
    %cst_25 = arith.constant dense<0.000000e+00> : vector<8x8xf32>
    %72 = tpu.matmul %69, %70, %cst_25 {dimension_numbers = #tpu.dot_dimension_numbers<[1], [1], [0], [0], [0, 0, 1, 0], [], []>} : vector<8x8xf32>, vector<8x8xf32>, vector<8x8xf32> -> vector<8x8xf32>
    %cst_26 = arith.constant -1.000000e+30 : f32
    %73 = vector.broadcast %cst_26 : f32 to vector<8x8xf32>
    %74 = arith.select %9, %72, %73 : vector<8x8xi1>, vector<8x8xf32>
    %cst_27 = arith.constant dense<0xFF800000> : vector<8xf32>
    %75 = vector.multi_reduction <maximumf>, %74, %cst_27 [1] : vector<8x8xf32> to vector<8xf32>
    %76 = vector.shape_cast %75 : vector<8xf32> to vector<8x1xf32>
    %77 = vector.broadcast %76 : vector<8x1xf32> to vector<8x8xf32>
    %78 = arith.subf %74, %77 : vector<8x8xf32>
    %79 = math.exp %78 : vector<8x8xf32>
    %cst_28 = arith.constant dense<0.000000e+00> : vector<8xf32>
    %80 = vector.multi_reduction <add>, %79, %cst_28 [1] : vector<8x8xf32> to vector<8xf32>
    %81 = vector.shape_cast %80 : vector<8xf32> to vector<8x1xf32>
    %cst_29 = arith.constant dense<0.000000e+00> : vector<8x8xf32>
    %82 = tpu.matmul %79, %71, %cst_29 {dimension_numbers = #tpu.dot_dimension_numbers<[1], [0], [0], [1], [0, 0, 1, 1], [], []>} : vector<8x8xf32>, vector<8x8xf32>, vector<8x8xf32> -> vector<8x8xf32>
    %83 = tpu.reciprocal %81 : vector<8x1xf32> -> vector<8x1xf32>
    %84 = vector.broadcast %83 : vector<8x1xf32> to vector<8x8xf32>
    %85 = arith.mulf %82, %84 : vector<8x8xf32>
    %86 = tpu.concatenate %28, %47, %66, %85 in 1 : vector<8x8xf32>, vector<8x8xf32>, vector<8x8xf32>, vector<8x8xf32> -> vector<8x32xf32>
    %c0_30 = arith.constant 0 : index
    %c0_31 = arith.constant 0 : index
    %87 = vector.load %arg4[%c0_30, %c0_31] : memref<32x32xf32, #tpu.memory_space<vmem>>, vector<32x32xf32>
    %cst_32 = arith.constant dense<0.000000e+00> : vector<8x32xf32>
    %88 = tpu.matmul %86, %87, %cst_32 {dimension_numbers = #tpu.dot_dimension_numbers<[1], [0], [0], [1], [0, 0, 1, 1], [], []>} : vector<8x32xf32>, vector<32x32xf32>, vector<8x32xf32> -> vector<8x32xf32>
    %c0_33 = arith.constant 0 : index
    %c0_34 = arith.constant 0 : index
    %89 = vector.load %arg5[%c0_33, %c0_34] : memref<1x32xf32, #tpu.memory_space<vmem>>, vector<1x32xf32>
    %90 = vector.broadcast %89 : vector<1x32xf32> to vector<8x32xf32>
    %91 = arith.addf %88, %90 : vector<8x32xf32>
    %c0_35 = arith.constant 0 : index
    %c0_36 = arith.constant 0 : index
    %c0_37 = arith.constant 0 : index
    %92 = vector.load %arg6[%c0_35, %c0_36, %c0_37] : memref<1x8x32xf32, #tpu.memory_space<vmem>>, vector<1x8x32xf32>
    %93 = vector.shape_cast %92 : vector<1x8x32xf32> to vector<8x32xf32>
    %94 = vector.shape_cast %91 : vector<8x32xf32> to vector<1x8x32xf32>
    tpu.vector_store %arg6[%c0_35, %c0_36, %c0_37], %94 {strides = array<i32>} : memref<1x8x32xf32, #tpu.memory_space<vmem>>, vector<1x8x32xf32>,
    return
  }
  func.func @transform_0(%arg0: i32) -> (i32, i32, i32) {
    %c0_i32 = arith.constant 0 : i32
    %c0_i32_0 = arith.constant 0 : i32
    %c0_i32_1 = arith.constant 0 : i32
    return %arg0, %c0_i32, %c0_i32_0 : i32, i32, i32
  }
  func.func @transform_1(%arg0: i32) -> (i32, i32) {
    %c0_i32 = arith.constant 0 : i32
    %c0_i32_0 = arith.constant 0 : i32
    %c0_i32_1 = arith.constant 0 : i32
    return %c0_i32, %c0_i32_0 : i32, i32
  }
  func.func @transform_2(%arg0: i32) -> (i32, i32) {
    %c0_i32 = arith.constant 0 : i32
    %c0_i32_0 = arith.constant 0 : i32
    %c0_i32_1 = arith.constant 0 : i32
    return %c0_i32, %c0_i32_0 : i32, i32
  }
  func.func @transform_3(%arg0: i32) -> (i32, i32) {
    %c0_i32 = arith.constant 0 : i32
    %c0_i32_0 = arith.constant 0 : i32
    %c0_i32_1 = arith.constant 0 : i32
    return %c0_i32, %c0_i32_0 : i32, i32
  }
  func.func @transform_4(%arg0: i32) -> (i32, i32) {
    %c0_i32 = arith.constant 0 : i32
    %c0_i32_0 = arith.constant 0 : i32
    %c0_i32_1 = arith.constant 0 : i32
    return %c0_i32, %c0_i32_0 : i32, i32
  }
  func.func @transform_5(%arg0: i32) -> (i32, i32, i32) {
    %c0_i32 = arith.constant 0 : i32
    %c0_i32_0 = arith.constant 0 : i32
    %c0_i32_1 = arith.constant 0 : i32
    return %arg0, %c0_i32, %c0_i32_0 : i32, i32, i32
  }
}

</mosaic_0001>

<bundles_post_ra>
// kernel: tpu_custom_call.1
= control target key start
LH: loop header
LB: loop body
LE: loop exit
PB: predicated region body
PF: predicated region fallthrough
CT: control target
= control target key end

     0   :  { %10 = vsyncpa [#allocation3], 0  ;;  %s1989_s0 = inlined_call_operand.hbm [shape: f32[2,8,32], index: 0, kind: input, shape index: {}]   ;;  %s1990_s1 = inlined_call_operand.hbm [shape: f32[32,96], index: 1, kind: input, shape index: {}]   ;;  %s1991_s2 = inlined_call_operand.vmem [shape: f32[1,96], index: 2, kind: input, shape index: {}]   ;;  %s1992_s3 = inlined_call_operand.hbm [shape: f32[32,32], index: 3, kind: input, shape index: {}]   ;;  %s1993_s4 = inlined_call_operand.vmem [shape: f32[1,32], index: 4, kind: input, shape index: {}]   ;;  %s1994_s5 = inlined_call_operand.hbm [shape: f32[2,8,32], index: 5, kind: output, shape index: {}]  }
   0x1   :  { %12 = vsyncpa [#allocation3 + $0x1], 0 }
   0x2   :  { %13 = vsyncpa [#allocation6], 0 }
   0x3   :  { %14 = vsyncpa [#allocation4], 0 }
   0x4   :  { %16 = vsyncpa [#allocation4 + $0x1], 0  ;;  %s1676_s18 = smov 0   ;;  %s1678_s19 = smov 0  }
   0x5   :  { %s1680_s20 = smov 0   ;;  %s1682_s21 = smov 0  }
   0x6 LB: > { %s1697_s22 = sadd.s32 4294967295, %s1621_s21   ;;  %s1231_s23 = sadd.s32 4294967294, %s1621_s21   ;;  %s1621_s21 = sphi %s1682_s21, %s2014_s21   ;;  %s1617_s20 = sphi %s1680_s20, %s2013_s20   ;;  %s1613_s19 = sphi %s1678_s19, %s2012_s19   ;;  %s1609_s18 = sphi %s1676_s18, %s2011_s18  }
   0x7   : > { %p42_p0 = scmp.ne.s32.totalorder %s1613_s19, %s1609_s18  ;;  %p1995_p1 = scmp.eq.s32.totalorder %s1697_s22, 0 }
   0x8   : > { %p156_p3 = scmp.eq.s32.totalorder %s1231_s23, 1  ;;  %p1232_p5 = scmp.ge.s32.totalorder %s1621_s21, 1 }
   0x9   : > { %p1706_p4 = por %p1995_p1, %p42_p0  ;;  %p163_p7 = scmp.lt.s32.totalorder %s1621_s21, 3 }
   0xa   : > { %p1711_p6 = por %p156_p3, %p42_p0  ;;  %s1623_s27 = smov [#allocation5]  }
   0xb   : > { %s1998_s24 = scalar_select %p1706_p4, 1, 0 }
   0xc   : > { %s1999_s25 = scalar_select %p1711_p6, 1, 0 }
   0xd   : > { %p1716_p8 = pnand %p1232_p5, %p163_p7  ;;  %s175_s28 = sshll.u32 %s1623_s27, 4  ;;  %s1720_s28 = int_to_ptr.vmem [resolvable:$true] %s175_s28 }
   0xe   : > { %s1624_s30 = smov [#allocation7]   ;;  %s1465_s9 = scalar_lea.hbm %s1990_s1, 512 }
   0xf   : > { %p1375_p9 = pneg %p1716_p8  ;;  %s191_s6 = sshll.u32 %s1624_s30, 4  ;;  %s1731_s6 = int_to_ptr.vmem [resolvable:$true] %s191_s6 }
  0x10   : > { %p1466_p12 = scmp.ne.s32.totalorder %s1990_s1, %s1465_s9  ;;  %p1472_p5 = scmp.lt.u32.totalorder %s1465_s9, %s1990_s1 }
  0x11   : > { %p1727_p11 = pnand %p1375_p9, %p1995_p1 }
  0x13   : > { %p1467_p13 = pneg %p1727_p11 }
  0x15   : > { %p1468_p0 = pnand %p1467_p13, %p1466_p12 }
  0x17   : > { %p1469_p3 = pneg %p1468_p0 }
  0x19   : > { %p1474_p7 = pnand %p1472_p5, %p1469_p3 }
  0x1b   : > { %1477 = shalt.err (!%p1474_p7)
}
  0x1c   : > { %s1478_s14 = scalar_lea.vmem %s1720_s28, 512  ;;  %p1486_p2 = scmp.lt.s32.totalorder %s1720_s28, %s1720_s28 }
  0x1d   : > { %p1479_p9 = scmp.ne.s32.totalorder %s1720_s28, %s1478_s14  ;;  %p1487_p12 = scmp.lt.s32.totalorder %s1478_s14, %s1478_s14 }
  0x1f   : > { %p1481_p10 = pnand %p1479_p9, %p1467_p13  ;;  %p1488_p0 = por %p1487_p12, %p1486_p2 }
  0x21   : > { %p1482_p1 = pneg %p1481_p10 }
  0x23   : > { %p1489_p6 = pnand %p1488_p0, %p1482_p1 }
  0x25   : > { %1492 = shalt.err (!%p1489_p6)
}
  0x26   : > { %s1625_s15 = smov 128   ;;  %s1626_s16 = smov 8  }
  0x27   : > { %1378 = dma.hbm_to_vmem [thread:$0]  (!%p1727_p11), %s1990_s1, 512, %s1720_s28, [#allocation6], %s1625_s15, %s1625_s15, %s1626_s16  }
  0x28   : > { %s1493_s7 = scalar_lea.hbm %s1992_s3, 512 }
  0x29   : > { %p1494_p2 = scmp.ne.s32.totalorder %s1992_s3, %s1493_s7  ;;  %p1500_p10 = scmp.lt.u32.totalorder %s1493_s7, %s1992_s3 }
  0x2b   : > { %p1496_p1 = pnand %p1494_p2, %p1467_p13 }
  0x2d   : > { %p1497_p6 = pneg %p1496_p1 }
  0x2f   : > { %p1502_p3 = pnand %p1500_p10, %p1497_p6 }
  0x31   : > { %1505 = shalt.err (!%p1502_p3)
}
  0x32   : > { %s1506_s28 = scalar_lea.vmem %s1731_s6, 512  ;;  %p1514_p12 = scmp.lt.s32.totalorder %s1731_s6, %s1731_s6 }
  0x33   : > { %p1507_p5 = scmp.ne.s32.totalorder %s1731_s6, %s1506_s28  ;;  %p1515_p0 = scmp.lt.s32.totalorder %s1506_s28, %s1506_s28 }
  0x35   : > { %p1509_p7 = pnand %p1507_p5, %p1467_p13  ;;  %p1516_p2 = por %p1515_p0, %p1514_p12 }
  0x37   : > { %p1510_p9 = pneg %p1509_p7 }
  0x39   : > { %p1517_p1 = pnand %p1516_p2, %p1510_p9 }
  0x3b   : > { %1520 = shalt.err (!%p1517_p1)
}
  0x3c   : > { %1381 = dma.hbm_to_vmem [thread:$0]  (!%p1727_p11), %s1992_s3, 512, %s1731_s6, [#allocation6], %s1625_s15, %s1625_s15, %s1626_s16  }
  0x3d   : > { %s1786_s14 = sadd.s32 1, %s1621_s21   ;;  %s29_s29 = sadd.s32 1, %s1617_s20 }
  0x3e   : > { %s26_s17 = ssub.s32 %s1621_s21, %s1786_s14  ;;  %p36_p13 = scmp.ne.s32.totalorder %s1617_s20, %s1613_s19 }
  0x3f   : > { %p27_p6 = scmp.eq.s32.totalorder %s26_s17, 0  ;;  %p37_p10 = scmp.eq.s32.totalorder %s1621_s21, 0 }
  0x40   : > { %p2002_p3 = scmp.eq.s32.totalorder %s1697_s22, 1  ;;  %p1392_p7 = scmp.lt.s32.totalorder %s1621_s21, 2 }
  0x41   : > { %s1802_s27 = scalar_select %p27_p6, %s1617_s20, %s29_s29  }
  0x42   : > { %p1796_p5 = por %p2002_p3, %p36_p13  ;;  %p38_p9 = por %p37_p10, %p36_p13 }
  0x43   : > { %s208_s30 = sand.u32 1, %s1617_s20   ;;  %s1237_s6 = sshll.u32 %s1621_s21, 7 }
  0x44   : > { %s2003_s23 = scalar_select %p1796_p5, 1, 0 }
  0x45   : > { %s1236_s7 = sshll.u32 %s208_s30, 3  ;;  %s1809_s8 = scalar_lea.hbm %s1989_s0, %s1237_s6 }
  0x46   : > { %s212_s9 = scalar_lea.vmem [#allocation2], %s1236_s7  ;;  %p1813_p11 = pnand %p1392_p7, %p38_p9 }
  0x47   : > { %s219_s10 = sshll.u32 %s212_s9, 4  ;;  %s209_s28 = scalar_lea.sflag [#allocation3], %s208_s30  ;;  %s1811_s10 = int_to_ptr.vmem [resolvable:$true] %s219_s10 }
  0x48   : > { %s1521_s12 = scalar_lea.hbm %s1809_s8, 128  ;;  %p1523_p0 = pneg %p1813_p11 }
  0x49   : > { %p1522_p12 = scmp.ne.s32.totalorder %s1809_s8, %s1521_s12  ;;  %s1526_s17 = scalar_lea.hbm %s1989_s0, 256 }
  0x4a   : > { %p1527_p13 = scmp.lt.u32.totalorder %s1809_s8, %s1989_s0  ;;  %p1528_p6 = scmp.lt.u32.totalorder %s1526_s17, %s1521_s12 }
  0x4b   : > { %p1524_p2 = pnand %p1523_p0, %p1522_p12  ;;  %p1530_p3 = scmp.lt.u32.totalorder %s1521_s12, %s1809_s8 }
  0x4c   : > { %p1529_p10 = por %p1528_p6, %p1527_p13 }
  0x4d   : > { %p1525_p1 = pneg %p1524_p2 }
  0x4e   : > { %p1531_p7 = por %p1530_p3, %p1529_p10 }
  0x50   : > { %p1532_p9 = pnand %p1531_p7, %p1525_p1 }
  0x52   : > { %1535 = shalt.err (!%p1532_p9)
}
  0x53   : > { %s1536_s30 = scalar_lea.vmem %s1811_s10, 128  ;;  %s1627_s15 = smov [#allocation2]  }
  0x54   : > { %p1537_p12 = scmp.ne.s32.totalorder %s1811_s10, %s1536_s30  ;;  %s1541_s16 = sshll.u32 %s1627_s15, 4  ;;  %s1542_s16 = int_to_ptr.vmem [resolvable:$false] %s1541_s16 }
  0x55   : > { %s1543_s9 = scalar_lea.vmem %s1542_s16, 256  ;;  %p1544_p4 = scmp.lt.s32.totalorder %s1811_s10, %s1542_s16 }
  0x56   : > { %p1539_p2 = pnand %p1537_p12, %p1523_p0  ;;  %p1545_p13 = scmp.lt.s32.totalorder %s1543_s9, %s1536_s30 }
  0x58   : > { %p1540_p5 = pneg %p1539_p2  ;;  %p1546_p6 = por %p1545_p13, %p1544_p4 }
  0x5a   : > { %p1547_p10 = pnand %p1546_p6, %p1540_p5 }
  0x5c   : > { %1550 = shalt.err (!%p1547_p10)
}
  0x5d   : > { %1385 = dma.hbm_to_vmem [thread:$0]  (!%p1813_p11), %s1809_s8, 128, %s1811_s10, %s209_s28  }
  0x5e   : > { %228 = sbr.rel (%p1716_p8) target bundleno = 1759 (0x6df), region = 40  ;;  %s1845_s12 = sand.u32 (!%p1716_p8), 1, %s1613_s19  }
  0x5f   : > { %s1239_s13 = sshll.u32 (!%p1716_p8), %s1845_s12, 3  ;;  %s231_s29 = scalar_lea.sflag (!%p1716_p8), [#allocation3], %s1845_s12 }
  0x60   : > { %s234_s17 = scalar_lea.vmem (!%p1716_p8), [#allocation2], %s1239_s13  ;;  %p2005_p4 = scmp.ne.s32.totalorder (!%p1716_p8), %s1998_s24, 0 }
  0x65   : > { %1596 = dma.done.wait (%p2005_p4), %s231_s29, 128  }
  0x66   : > { %1598 = vsyncadd (%p2005_p4), %s231_s29, 4294967168  ;;  %p2006_p5 = scmp.eq.s32.totalorder %s1697_s22, 0 }
  0x68   : > { %1600 = dma.done.wait (%p2006_p5), [#allocation6], 1024   ;;  %p2007_p8 = pmov %p2006_p5 }
  0x69   : > { %v1628_v0 = vmov 0.0|0.0   ;;  %vm1629_vm0 = vmmov 0   ;;  %v1630_v1 = vmov 0.0   ;;  %v270_v2 = vld [vmem:[#allocation5] sm:$0xff]  ;;  %v271_v3 = vld [vmem:[#allocation5 + $0x8] sm:$0xff]  ;;  %v272_v4 = vld [vmem:[#allocation5 + $0x10] sm:$0xff]  ;;  %v355_v22 = vlaneseq }
  0x6a   : > { %1602 = vsyncadd (%p2007_p8), [#allocation6], 4294966272  ;;  %1351 = vmatprep.subr.bf16.mxu0 %v1628_v0  ;;  %1297 = vmatprep.mubr.msk.f32.mxu0 %vm1629_vm0, %v1630_v1  ;;  %v1352_v5 = vpack.c.bf16 %v271_v3, %v270_v2  ;;  %v273_v6 = vld [vmem:[#allocation5 + $0x18] sm:$0xff]  ;;  %vm281_vm1 = vcmask 261120   ;;  %v1243_v9 = vld [vmem:[%s1991_s2] ss:$0 sm:$0xff] }
  0x6b   : > { %1300 = vmatprep.subr.mxu1 %v1630_v1  ;;  %1302 = vmatprep.mubr.msk.f32.mxu1 %vm1629_vm0, %v1630_v1  ;;  %v1355_v7 = vpack.c.bf16 %v273_v6, %v272_v4  ;;  %v269_v8 = vld [vmem:[%s234_s17] sm:$0xff]  ;;  %s1631_s8 = smov 64   ;;  %s1632_s10 = smov 96   ;;  %vm364_vm2 = vcmask 64512   ;;  %v356_v23 = vshrl.u32 %v355_v22, 7  ;;  %v358_v24 = vand.u32 127, %v355_v22 }
  0x6c   : > { %1353 = vmatpush3.bf16.msra.mxu0 %v1352_v5  ;;  %s1633_s11 = smov 88   ;;  %s1634_s28 = smov 120   ;;  %v1043_v5 = vld [vmem:[#allocation7] sm:$0xff]  ;;  %v1044_v6 = vld [vmem:[#allocation7 + $0x8] sm:$0xff]  ;;  %vm1039_vm4 = vcmask 130048   ;;  %vm1041_vm5 = vcmask 195584  }
  0x6d   : > { %1354 = vmatprep.subr.bf16.mxu0 %v1628_v0  ;;  %s1635_s7 = smov 80   ;;  %s1636_s6 = smov 112   ;;  %vm359_vm3 = vcmp.le.s32.totalorder %v358_v24, %v356_v23 }
  0x6e   : > { %s1637_s30 = smov 72   ;;  %s1638_s15 = smov 104  }
  0x6f   : > { %s1639_s16 = smov 56   ;;  %s1640_s9 = smov 40  }
  0x70   : > { %1356 = vmatpush3.bf16.msra.mxu0 %v1355_v7  ;;  %s1641_s29 = smov 48   ;;  %s1642_s17 = smov 8  }
  0x71   : > { %1320 = vmatprep.subr.mxu0 %v1630_v1  ;;  %s1643_s24 = smov 16   ;;  %s1644_s26 = smov 24  }
  0x72   : > { %p2008_p0 = scmp.ne.s32.totalorder %s2003_s23, 0 }
  0x73   : > { %1298 = vmatmul.mubr.msk.f32.vlgmr.msra.gmra.mrb[0].mxu0 %vm281_vm1, %v269_v8  ;;  %v1358_v8 = vpack.c.bf16 %v1044_v6, %v1043_v5 }
  0x74   : > { %1322 = vmatprep.mubr.msk.f32.mxu0 %vm1629_vm0, %v1630_v1 }
 0x146   : > { %v351_v10 = vpop.f32.mrb[0].mxu0 }
 0x147   : > { %v1873_v11 = vadd.f32 %v1243_v9, %v351_v10  ;;  %v1299_v12 = vpop.f32.mrb[1].mxu0  ;;  %v1045_v9 = vld [vmem:[#allocation7 + $0x10] sm:$0xff]  ;;  %v1046_v10 = vld [vmem:[#allocation7 + $0x18] sm:$0xff] }
 0x148   : > { %v1361_v12 = vpack.c.bf16 %v1046_v10, %v1045_v9 }
 0x149   : > { %450 = vrot.lane.b32.xlu1 %v1873_v11, %s1631_s8  ;;  %362 = vrot.lane.b32.xlu0 %v1873_v11, %s1632_s10  ;;  %v360_v13 = vmul.f32 0.17677669, %v1873_v11 }
 0x14d   : > { %530 = vrot.lane.b32.xlu1 %v1873_v11, %s1633_s11  ;;  %s1260_s11 = sshll.u32 %s1697_s22, 7 }
 0x151   : > { %528 = vrot.lane.b32.xlu1 %v360_v13, %s1634_s28  ;;  %s268_s28 = scalar_lea.vmem [#allocation8], %s1239_s13  ;;  %s1645_s13 = smov [#allocation8]  }
 0x155   : > { %696 = vrot.lane.b32.xlu1 %v1873_v11, %s1635_s7  ;;  %s1142_s7 = sshll.u32 %s268_s28, 4  ;;  %s1946_s7 = int_to_ptr.vmem [resolvable:$true] %s1142_s7 }
 0x156   : > { %s1551_s22 = scalar_lea.vmem %s1946_s7, 128 }
 0x157   : > { %p1552_p11 = scmp.ne.s32.totalorder %s1946_s7, %s1551_s22 }
 0x159   : > { %694 = vrot.lane.b32.xlu1 %v360_v13, %s1636_s6  ;;  %p1553_p1 = pnand %p1552_p11, %p2008_p0 }
 0x15b   : > { %p1554_p3 = pneg %p1553_p1 }
 0x15d   : > { %862 = vrot.lane.b32.xlu1 %v1873_v11, %s1637_s30 }
 0x161   : > { %860 = vrot.lane.b32.xlu1 %v360_v13, %s1638_s15  ;;  %s1944_s15 = scalar_lea.hbm %s1994_s5, %s1260_s11 }
 0x1bb   : > { %v451_v14 = vpop.permute.xlu1 %450  ;;  %v363_v15 = vpop.permute.xlu0 %362 }
 0x1bc   : > { %1301 = vmatpush3.xpose.msk.msra.mxu1 %vm364_vm2, %v363_v15 }
 0x1bd   : > { %1305 = vmatprep.subr.mxu1 %v1630_v1 }
 0x1bf   : > { %v531_v16 = vpop.permute.xlu1 %530  ;;  %1303 = vmatmul.mubr.msk.f32.vlgmr.msra.gmra.mrb[0].mxu1 %vm364_vm2, %v360_v13 }
 0x1c0   : > { %1306 = vmatpush3.msra.mxu1 %v451_v14  ;;  %1307 = vmatprep.mubr.msk.f32.mxu1 %vm1629_vm0, %v1630_v1 }
 0x1c1   : > { %1310 = vmatprep.subr.mxu1 %v1630_v1 }
 0x1c3   : > { %v529_v17 = vpop.permute.xlu1 %528 }
 0x1c7   : > { %v697_v18 = vpop.permute.xlu1 %696 }
 0x1c8   : > { %1321 = vmatpush3.xpose.msk.msra.mxu0 %vm364_vm2, %v697_v18 }
 0x1c9   : > { %1330 = vmatprep.subr.mxu0 %v1630_v1 }
 0x1cb   : > { %v695_v19 = vpop.permute.xlu1 %694 }
 0x1cc   : > { %1323 = vmatmul.mubr.msk.f32.vlgmr.msra.gmra.mrb[2].mxu0 %vm364_vm2, %v695_v19 }
 0x1cd   : > { %1332 = vmatprep.mubr.msk.f32.mxu0 %vm1629_vm0, %v1630_v1 }
 0x1cf   : > { %v863_v20 = vpop.permute.xlu1 %862 }
 0x1d0   : > { %1331 = vmatpush3.xpose.msk.msra.mxu0 %vm364_vm2, %v863_v20 }
 0x1d1   : > { %1357 = vmatprep.subr.bf16.mxu0 %v1628_v0 }
 0x1d3   : > { %v861_v21 = vpop.permute.xlu1 %860 }
 0x1d4   : > { %1333 = vmatmul.mubr.msk.f32.vlgmr.msra.gmra.mrb[4].mxu0 %vm364_vm2, %v861_v21 }
 0x1d5   : > { %1348 = vmatprep.mubr.msk.f32.mxu0 %vm1629_vm0, %v1630_v1  ;;  %1359 = vmatpush3.bf16.msra.mxu0 %v1358_v8 }
 0x1d6   : > { %1360 = vmatprep.subr.bf16.mxu0 %v1628_v0 }
 0x1d9   : > { %1362 = vmatpush3.bf16.msra.mxu0 %v1361_v12 }
 0x292   : > { %v436_v25 = vpop.f32.mrb[0].mxu1 }
 0x293   : > { %v440_v26 = vsel %vm359_vm3, %v436_v25, -1e+30  ;;  %v1304_v27 = vpop.f32.mrb[1].mxu1 }
 0x294   : > { %v441_v28 = vsel %vm364_vm2, %v440_v26, -inf }
 0x295   : > { %442 = vmax.xlane.f32.xlu0 %v441_v28 }
 0x29f   : > { %v768_v29 = vpop.f32.mrb[2].mxu0 }
 0x2a0   : > { %v1324_v30 = vpop.f32.mrb[3].mxu0  ;;  %v772_v33 = vsel %vm359_vm3, %v768_v29, -1e+30 }
 0x2a1   : > { %v773_v34 = vsel %vm364_vm2, %v772_v33, -inf }
 0x2a7   : > { %v934_v31 = vpop.f32.mrb[4].mxu0 }
 0x2a8   : > { %v1334_v32 = vpop.f32.mrb[5].mxu0  ;;  %v938_v35 = vsel %vm359_vm3, %v934_v31, -1e+30 }
 0x2a9   : > { %v939_v36 = vsel %vm364_vm2, %v938_v35, -inf  ;;  %v1257_v32 = vld [vmem:[%s1993_s4] ss:$0 sm:$0xff] }
 0x2ab   : > { %616 = vrot.lane.b32.xlu0 %v1873_v11, %s1639_s16  ;;  %s1129_s16 = scalar_lea.sflag [#allocation4], %s1845_s12 }
 0x2ca   : > { %774 = vmax.xlane.f32.xlu0 %v773_v34 }
 0x2ce   : > { %940 = vmax.xlane.f32.xlu0 %v939_v36 }
 0x2e4   : > { %948 = vrot.lane.b32.xlu0 %v1873_v11, %s1640_s9  ;;  %s1555_s9 = sshll.u32 %s1645_s13, 4  ;;  %s1556_s9 = int_to_ptr.vmem [resolvable:$false] %s1555_s9 }
 0x2e5   : > { %p1558_p7 = scmp.lt.s32.totalorder %s1946_s7, %s1556_s9 }
 0x322   : > { %v443_v37 = vpop.xlane.xlu0 %442 }
 0x323   : > { %v444_v38 = vsub.f32 %v440_v26, %v443_v37 }
 0x325   : > { %v445_v39 = vmul.f32 1.442695, %v444_v38 }
 0x326   : > { %v617_v41 = vpop.permute.xlu0 %616 }
 0x327   : > { %1449 = vpow2.f32 %v445_v39 }
 0x331   : > { %v1450_v40 = vpop.eup %1449 }
 0x332   : > { %1308 = vmatmul.mubr.msk.f32.vlgmr.msra.gmra.mrb[2].mxu1 %vm364_vm2, %v1450_v40  ;;  %v447_v3 = vsel %vm364_vm2, %v1450_v40, 0.0 }
 0x333   : > { %1311 = vmatpush3.xpose.msk.msra.mxu1 %vm364_vm2, %v531_v16  ;;  %1312 = vmatprep.mubr.msk.f32.mxu1 %vm1629_vm0, %v1630_v1 }
 0x334   : > { %1315 = vmatprep.subr.mxu1 %v1630_v1 }
 0x336   : > { %1313 = vmatmul.mubr.msk.f32.vlgmr.msra.gmra.mrb[4].mxu1 %vm364_vm2, %v529_v17 }
 0x337   : > { %1316 = vmatpush3.msra.mxu1 %v617_v41  ;;  %1317 = vmatprep.mubr.msk.f32.mxu1 %vm1629_vm0, %v1630_v1 }
 0x338   : > { %1325 = vmatprep.subr.mxu1 %v1630_v1 }
 0x357   : > { %v775_v48 = vpop.xlane.xlu0 %774 }
 0x358   : > { %v776_v49 = vsub.f32 %v772_v33, %v775_v48 }
 0x35a   : > { %v777_v50 = vmul.f32 1.442695, %v776_v49 }
 0x35b   : > { %v941_v53 = vpop.xlane.xlu0 %940 }
 0x35c   : > { %1451 = vpow2.f32 %v777_v50  ;;  %v942_v54 = vsub.f32 %v938_v35, %v941_v53 }
 0x35e   : > { %v943_v57 = vmul.f32 1.442695, %v942_v54 }
 0x35f   : > { %v949_v63 = vpop.permute.xlu0 %948 }
 0x366   : > { %v1452_v51 = vpop.eup %1451 }
 0x367   : > { %v779_v52 = vsel %vm364_vm2, %v1452_v51, 0.0 }
 0x405   : > { %v1914_v42 = vpop.f32.mrb[2].mxu1 }
 0x406   : > { %v1309_v43 = vpop.f32.mrb[3].mxu1 }
 0x409   : > { %v602_v44 = vpop.f32.mrb[4].mxu1 }
 0x40a   : > { %v606_v45 = vsel %vm359_vm3, %v602_v44, -1e+30  ;;  %v1314_v46 = vpop.f32.mrb[5].mxu1 }
 0x40b   : > { %v607_v47 = vsel %vm364_vm2, %v606_v45, -inf }
 0x40c   : > { %608 = vmax.xlane.f32.xlu1 %v607_v47 }
 0x41d   : > { %782 = vrot.lane.b32.xlu1 %v1873_v11, %s1641_s29  ;;  %s1557_s29 = scalar_lea.vmem %s1556_s9, 256 }
 0x41e   : > { %p1559_p9 = scmp.lt.s32.totalorder %s1557_s29, %s1551_s22 }
 0x420   : > { %p1560_p12 = por %p1559_p9, %p1558_p7 }
 0x422   : > { %p1561_p2 = pnand %p1560_p12, %p1554_p3 }
 0x441   : > { %780 = vadd.xlane.f32.xlu1 %v779_v52 }
 0x499   : > { %v609_v55 = vpop.xlane.xlu1 %608 }
 0x49a   : > { %v610_v56 = vsub.f32 %v606_v45, %v609_v55 }
 0x49c   : > { %v611_v58 = vmul.f32 1.442695, %v610_v56 }
 0x49d   : > { %v783_v60 = vpop.permute.xlu1 %782 }
 0x49e   : > { %1453 = vpow2.f32 %v611_v58 }
 0x49f   : > { %1455 = vpow2.f32 %v943_v57 }
 0x4a8   : > { %v1454_v59 = vpop.eup %1453 }
 0x4a9   : > { %1318 = vmatmul.mubr.msk.f32.vlgmr.msra.gmra.mrb[6].mxu1 %vm364_vm2, %v1454_v59  ;;  %v613_v61 = vsel %vm364_vm2, %v1454_v59, 0.0  ;;  %v1456_v62 = vpop.eup %1455 }
 0x4aa   : > { %1326 = vmatpush3.msra.mxu1 %v783_v60  ;;  %614 = vadd.xlane.f32.xlu0 %v613_v61  ;;  %v945_v2 = vsel %vm364_vm2, %v1456_v62, 0.0 }
 0x4ab   : > { %1327 = vmatprep.mubr.msk.f32.mxu1 %vm1629_vm0, %v1630_v1  ;;  %1335 = vmatprep.subr.mxu1 %v1630_v1 }
 0x4ad   : > { %1328 = vmatmul.mubr.msk.f32.vlgmr.msra.gmra.mrb[8].mxu1 %vm364_vm2, %v1452_v51 }
 0x4ae   : > { %1336 = vmatpush3.msra.mxu1 %v949_v63  ;;  %946 = vadd.xlane.f32.xlu0 %v945_v2 }
 0x4af   : > { %1337 = vmatprep.mubr.msk.f32.mxu1 %vm1629_vm0, %v1630_v1 }
 0x4b1   : > { %1338 = vmatmul.mubr.msk.f32.vlgmr.msra.gmra.mrb[10].mxu1 %vm364_vm2, %v1456_v62 }
 0x4b2   : > { %448 = vadd.xlane.f32.xlu0 %v447_v3 }
 0x4ce   : > { %v781_v7 = vpop.xlane.xlu1 %780 }
 0x537   : > { %v615_v4 = vpop.xlane.xlu0 %614 }
 0x538   : > { %1457 = vrcp.f32 %v615_v4 }
 0x539   : > { %1459 = vrcp.f32 %v781_v7 }
 0x53b   : > { %v947_v11 = vpop.xlane.xlu0 %946 }
 0x53c   : > { %1461 = vrcp.f32 %v947_v11 }
 0x53f   : > { %v449_v23 = vpop.xlane.xlu0 %448 }
 0x540   : > { %1463 = vrcp.f32 %v449_v23 }
 0x542   : > { %v1458_v1 = vpop.eup %1457 }
 0x543   : > { %v1460_v16 = vpop.eup %1459 }
 0x546   : > { %v1462_v20 = vpop.eup %1461 }
 0x54a   : > { %v1464_v24 = vpop.eup %1463 }
 0x54b   : > { %v527_v26 = vmul.f32 %v1464_v24, %v1914_v42 }
 0x57c   : > { %v688_v13 = vpop.f32.mrb[6].mxu1 }
 0x57d   : > { %v693_v14 = vmul.f32 %v1458_v1, %v688_v13  ;;  %v1319_v15 = vpop.f32.mrb[7].mxu1 }
 0x57f   : > { %1027 = vrot.lane.b32.xlu0 %v693_v14, %s1642_s17 }
 0x580   : > { %v854_v17 = vpop.f32.mrb[8].mxu1 }
 0x581   : > { %v859_v18 = vmul.f32 %v1460_v16, %v854_v17  ;;  %v1329_v19 = vpop.f32.mrb[9].mxu1 }
 0x583   : > { %1031 = vrot.lane.b32.xlu1 %v859_v18, %s1643_s24 }
 0x584   : > { %v1020_v0 = vpop.f32.mrb[10].mxu1 }
 0x585   : > { %v1025_v21 = vmul.f32 %v1462_v20, %v1020_v0  ;;  %v1339_v22 = vpop.f32.mrb[11].mxu1 }
 0x587   : > { %1035 = vrot.lane.b32.xlu0 %v1025_v21, %s1644_s26 }
 0x5f1   : > { %v1028_v25 = vpop.permute.xlu0 %1027 }
 0x5f2   : > { %v1038_v28 = vsel %vm364_vm2, %v527_v26, %v1028_v25 }
 0x5f5   : > { %v1032_v27 = vpop.permute.xlu1 %1031 }
 0x5f6   : > { %v1040_v29 = vsel %vm1039_vm4, %v1038_v28, %v1032_v27 }
 0x5f9   : > { %v1036_v30 = vpop.permute.xlu0 %1035 }
 0x5fa   : > { %v1042_v31 = vsel %vm1041_vm5, %v1040_v29, %v1036_v30 }
 0x5fb   : > { %1349 = vmatmul.mubr.msk.f32.vlgmr.msra.gmra.mrb[6].mxu0 %vm281_vm1, %v1042_v31 }
 0x6ce   : > { %v1123_v33 = vpop.f32.mrb[6].mxu0 }
 0x6cf   : > { %v1124_v34 = vadd.f32 %v1257_v32, %v1123_v33  ;;  %v1350_v35 = vpop.f32.mrb[7].mxu0 }
 0x6d1   : > { %1127 = vst.msk [vmem:[%s268_s28] sm:$0xff] %vm281_vm1, %v1124_v34 }
 0x6d2   : > { %1564 = shalt.err (!%p1561_p2)
}
 0x6d3   : > { %s1565_s12 = scalar_lea.hbm %s1944_s15, 128  ;;  %s1569_s26 = scalar_lea.hbm %s1994_s5, 256 }
 0x6d4   : > { %p1566_p13 = scmp.ne.s32.totalorder %s1944_s15, %s1565_s12  ;;  %p1570_p4 = scmp.lt.u32.totalorder %s1944_s15, %s1994_s5 }
 0x6d5   : > { %p1571_p5 = scmp.lt.u32.totalorder %s1569_s26, %s1565_s12  ;;  %p1573_p11 = scmp.lt.u32.totalorder %s1565_s12, %s1944_s15 }
 0x6d6   : > { %p1567_p6 = pnand %p1566_p13, %p2008_p0 }
 0x6d7   : > { %p1572_p8 = por %p1571_p5, %p1570_p4 }
 0x6d8   : > { %p1568_p10 = pneg %p1567_p6 }
 0x6d9   : > { %p1574_p1 = por %p1573_p11, %p1572_p8 }
 0x6db   : > { %p1575_p3 = pnand %p1574_p1, %p1568_p10 }
 0x6dd   : > { %1578 = shalt.err (!%p1575_p3)
}
 0x6de   : > { %1373 = dma.vmem_to_hbm [thread:$0]  (%p2008_p0), %s1946_s7, 128, %s1944_s15, %s1129_s16  }
 0x6df PF: > { %s1154_s11 = sand.u32 1, %s1609_s18   ;;  %p2009_p7 = scmp.ne.s32.totalorder %s1999_s25, 0 }
 0x6e0   : > { %p2010_p9 = scmp.ge.s32.totalorder %s1621_s21, 2  ;;  %s1155_s28 = scalar_lea.sflag [#allocation4], %s1154_s11 }
 0x6e2   : > { %p1387_p12 = pnand %p2010_p9, %p2009_p7 }
 0x6e4   : > { %1604 = dma.done.wait (!%p1387_p12), %s1155_s28, 128  }
 0x6e5   : > { %1606 = vsyncadd (!%p1387_p12), %s1155_s28, 4294967168  ;;  %p19_p2 = scmp.ge.s32.totalorder %s1786_s14, 4   ;;  %s2011_s18 = smov %s1613_s19 }
 0x6e6   : > { %s2012_s19 = smov %s1617_s20  ;;  %s2013_s20 = smov %s1802_s27 }
 0x6e7   : > { %s2014_s21 = smov %s1786_s14  ;;  %21 = sbr.rel (!%p19_p2) target bundleno = 6 (0x6), region = 93 }
 0x6ee   :  { %1160 = vsyncpa [#allocation3], 1 }
 0x6ef   :  { %1162 = vsyncpa [#allocation3 + $0x1], 1 }
 0x6f0   :  { %1163 = vsyncpa [#allocation6], 1 }
 0x6f1   :  { %1164 = vsyncpa [#allocation4], 1 }
 0x6f2   :  { %1166 = vsyncpa [#allocation4 + $0x1], 1 }

</bundles_post_ra>
